<compile_context>
chip_gen: v6e
topology: v6e:2x2x1
jax: 0.10.0
libtpu: 0.0.40
codegen_flags: <defaults>
</compile_context>

<pallas_src>
import functools

import jax
import jax.numpy as jnp
from jax.experimental import pallas as pl
from jax.experimental.pallas import tpu as pltpu


_LANES = 128
_MAX_BLOCK_ROWS = 8192        # 4 MiB per f32 input block (8192 rows x 128 lanes x 4 B)
_FORCE_SPLIT_ROWS = 1024      # >= this many 128-lane rows -> split grid for megacore


def _round_up(x, m):
    return -(-x // m) * m


def _sublane_multiple(dtype):
    # f32 -> 8, bf16/f16 -> 16, int8/fp8 -> 32 (native (8*packing, 128) tiling).
    return max(8, 32 // jnp.dtype(dtype).itemsize)


def _vmem_capacity_bytes():
    try:
        return int(pltpu.get_tpu_info().vmem_capacity_bytes)
    except Exception:
        return 64 * 1024 * 1024        # conservative default = v7x per-TC VMEM


def _tensorcores_per_chip():
    try:
        kind = jax.devices()[0].device_kind.lower()
    except Exception:
        return 1
    return 2 if ("v7" in kind or "7x" in kind) else 1


def _match_widths(pred, real):
    """Right-pad the shorter tensor of the pair with -1 (== torch F.pad value=-1)."""
    dt = jnp.promote_types(pred.dtype, real.dtype)
    pred = pred.astype(dt)
    real = real.astype(dt)
    wp, wr = pred.shape[1], real.shape[1]
    if wp < wr:
        pred = jnp.pad(pred, ((0, 0), (0, wr - wp)), constant_values=-1.0)
    elif wr < wp:
        real = jnp.pad(real, ((0, 0), (0, wp - wr)), constant_values=-1.0)
    return pred, real


def _lane_dense(x, rows):
    """(batch, w) -> (rows, 128): flatten row-major, zero-pad tail, reshape."""
    flat = x.reshape(-1)
    pad = rows * _LANES - flat.shape[0]
    if pad:
        flat = jnp.pad(flat, (0, pad))          # 0 on both operands -> |0-0| = 0
    return flat.reshape(rows, _LANES)


def _make_kernel(tbc, tbu, inv_nc, inv_nu, accumulate):
    """Fused L1(c) + L1(u) kernel over lane-dense (TB,128) blocks."""

    def pair_tile(p_ref, r_ref, tb, scale):
        d = jnp.abs(p_ref[...].astype(jnp.float32) - r_ref[...].astype(jnp.float32))
        # Sublane-group reduction: (tb,128) -> (tb//8, 8, 128) -> sum(axis=0).
        # Splits the sublane dim at multiples of 8 (no tile-boundary crossing),
        # so it lowers to plain VALU vreg adds; no cross-lane XLU reduce,
        # no scalar broadcast.  Compile-time 1/n scale (multiply, never divide).
        return d.reshape(tb // 8, 8, _LANES).sum(axis=0) * scale

    if accumulate:
        # v5e/v6e path: output block index is constant across the grid axis, so
        # the (8,128) output stays resident in VMEM and is written back once.
        def kernel(cp_ref, cr_ref, up_ref, ur_ref, out_ref):
            @pl.when(pl.program_id(0) == 0)
            def _init():
                out_ref[...] = jnp.zeros_like(out_ref)

            out_ref[...] += (pair_tile(cp_ref, cr_ref, tbc, inv_nc)
                             + pair_tile(up_ref, ur_ref, tbu, inv_nu))
    else:
        # v7x path: one partial (8,128) tile per grid step, grid axis "parallel"
        # so both TensorCores stream disjoint halves of the inputs.
        def kernel(cp_ref, cr_ref, up_ref, ur_ref, out_ref):
            tile = (pair_tile(cp_ref, cr_ref, tbc, inv_nc)
                    + pair_tile(up_ref, ur_ref, tbu, inv_nu))
            out_ref[...] = tile[None, :, :]

    return kernel


def _parser_loss(c_pred, c_real, u_pred, u_real, *,
                 max_block_rows=_MAX_BLOCK_ROWS, force_parallel_partials=None):
    inputs = (c_pred, c_real, u_pred, u_real)
    assert all(x.ndim == 2 for x in inputs), "expected (batch, width) inputs"
    batch = c_pred.shape[0]
    assert all(x.shape[0] == batch for x in inputs)
    assert batch > 0 and min(x.shape[1] for x in inputs) > 0, "empty L1 mean undefined"

    # 1) Match widths within each pair (torch pads the shorter with -1).
    cp, cr = _match_widths(c_pred, c_real)
    up, ur = _match_widths(u_pred, u_real)
    n_c = cp.shape[0] * cp.shape[1]            # element counts AFTER -1 padding
    n_u = up.shape[0] * up.shape[1]
    inv_nc = 1.0 / float(n_c)
    inv_nu = 1.0 / float(n_u)

    # 2) Plan lane-dense tiling with correct VMEM accounting.
    rows_c = -(-n_c // _LANES)
    rows_u = -(-n_u // _LANES)
    sub_c = _sublane_multiple(cp.dtype)
    sub_u = _sublane_multiple(up.dtype)
    item_c = jnp.dtype(cp.dtype).itemsize
    item_u = jnp.dtype(up.dtype).itemsize

    vmem_cap = _vmem_capacity_bytes()
    # ~40 MiB live cap on v7x (64 MiB/TC), 48 MiB elsewhere (128 MiB physical).
    live_budget = min((vmem_cap * 5) // 8, 48 << 20)

    if force_parallel_partials is None:
        parallel = _tensorcores_per_chip() > 1
    else:
        parallel = bool(force_parallel_partials)

    rows_max = max(rows_c, rows_u)
    num_tiles = max(1, -(-rows_max // max_block_rows))
    if parallel and rows_max >= _FORCE_SPLIT_ROWS:
        num_tiles = max(num_tiles, 2)          # never leave the 2nd TC idle
    if parallel and num_tiles > 1:
        num_tiles += num_tiles % 2             # even split across 2 TensorCores
    while True:
        tbc = _round_up(max(1, -(-rows_c // num_tiles)), sub_c)
        tbu = _round_up(max(1, -(-rows_u // num_tiles)), sub_u)
        # Footprint: 128-lane rows x itemsize x 2 arrays/pair x 2 pipeline buffers.
        live = 2 * 2 * _LANES * (tbc * item_c + tbu * item_u) + 2 * 8 * _LANES * 4
        if live <= live_budget or (tbc <= sub_c and tbu <= sub_u):
            break
        num_tiles += 2 if parallel else 1

    vmem_limit = int(max(live + (8 << 20), min(48 << 20, vmem_cap - (8 << 20))))

    # 3) Lane-dense operands: zero row-padding on both sides -> no in-kernel masks.
    cp2 = _lane_dense(cp, num_tiles * tbc)
    cr2 = _lane_dense(cr, num_tiles * tbc)
    up2 = _lane_dense(up, num_tiles * tbu)
    ur2 = _lane_dense(ur, num_tiles * tbu)

    kernel = _make_kernel(tbc, tbu, inv_nc, inv_nu, accumulate=not parallel)

    in_specs = [
        pl.BlockSpec((tbc, _LANES), lambda i: (i, 0)),
        pl.BlockSpec((tbc, _LANES), lambda i: (i, 0)),
        pl.BlockSpec((tbu, _LANES), lambda i: (i, 0)),
        pl.BlockSpec((tbu, _LANES), lambda i: (i, 0)),
    ]
    if parallel:
        out_shape = jax.ShapeDtypeStruct((num_tiles, 8, _LANES), jnp.float32)
        out_specs = pl.BlockSpec((1, 8, _LANES), lambda i: (i, 0, 0))
        semantics = ("parallel",)
        out_elems = num_tiles * 8 * _LANES
    else:
        out_shape = jax.ShapeDtypeStruct((8, _LANES), jnp.float32)
        out_specs = pl.BlockSpec((8, _LANES), lambda i: (0, 0))
        semantics = ("arbitrary",)
        out_elems = 8 * _LANES

    bytes_in = (cp2.size * item_c + cr2.size * item_c
                + up2.size * item_u + ur2.size * item_u)
    cost = pl.CostEstimate(
        flops=4 * (n_c + n_u),
        transcendentals=0,
        bytes_accessed=int(bytes_in + out_elems * 4),
    )

    partial_tiles = pl.pallas_call(
        kernel,
        out_shape=out_shape,
        grid_spec=pltpu.PrefetchScalarGridSpec(
            num_scalar_prefetch=0,
            grid=(num_tiles,),
            in_specs=in_specs,
            out_specs=out_specs,
        ),
        compiler_params=pltpu.CompilerParams(
            dimension_semantics=semantics,
            vmem_limit_bytes=vmem_limit,
        ),
        cost_estimate=cost,
    )(cp2, cr2, up2, ur2)

    # Tiny epilogue: reduce the lane-resident partial tile(s) once in JAX.
    return jnp.sum(partial_tiles)


@functools.partial(jax.jit, static_argnames=("max_block_rows", "force_parallel_partials"))
def _parser_loss_jit(c_pred, c_real, u_pred, u_real,
                     max_block_rows=_MAX_BLOCK_ROWS, force_parallel_partials=None):
    return _parser_loss(c_pred, c_real, u_pred, u_real,
                        max_block_rows=max_block_rows,
                        force_parallel_partials=force_parallel_partials)


class ParserLoss:
    """JAX/Pallas port of the PyTorch ParserLoss module (forward only)."""

    def __init__(self, max_c_len):
        self.max_c_len = max_c_len    # kept for parity; unused in forward (as in torch)

    def __call__(self, d_pred, c_pred, u_pred, d_real, c_real, u_real, length_batch):
        # d_pred / d_real / length_batch are unused in the original forward.
        return _parser_loss_jit(c_pred, c_real, u_pred, u_real)


def _reference(c_pred, c_real, u_pred, u_real):
    """Pure-JAX reference mirroring the PyTorch code (explicit -1 pad)."""
    def pad_pair(p, r):
        if p.shape[1] != r.shape[1]:
            n = abs(p.shape[1] - r.shape[1])
            if r.shape[1] > p.shape[1]:
                p = jnp.pad(p, ((0, 0), (0, n)), constant_values=-1.0)
            else:
                r = jnp.pad(r, ((0, 0), (0, n)), constant_values=-1.0)
        return p, r

    cp, cr = pad_pair(c_pred, c_real)
    up, ur = pad_pair(u_pred, u_real)
    return jnp.mean(jnp.abs(cp - cr)) + jnp.mean(jnp.abs(up - ur))


if __name__ == "__main__":
    key = jax.random.PRNGKey(0)
    k = jax.random.split(key, 10)

    # --- 1) module-shaped small inputs (mismatched c widths), via the class -----
    batch = 2
    d_pred = jax.random.normal(k[0], (batch, 6), dtype=jnp.float32)
    d_real = jax.random.normal(k[1], (batch, 6), dtype=jnp.float32)
    c_pred = jax.random.normal(k[2], (batch, 8), dtype=jnp.float32)
    c_real = jax.random.normal(k[3], (batch, 12), dtype=jnp.float32)
    u_pred = jax.random.normal(k[4], (batch, 10), dtype=jnp.float32)
    u_real = jax.random.normal(k[5], (batch, 10), dtype=jnp.float32)
    length_batch = jnp.array([8, 10], dtype=jnp.int32)     # unused (parity)

    loss_fn = ParserLoss(max_c_len=12)
    loss = jax.block_until_ready(
        loss_fn(d_pred, c_pred, u_pred, d_real, c_real, u_real, length_batch))
    ref = _reference(c_pred, c_real, u_pred, u_real)
    assert jnp.allclose(loss, ref, rtol=1e-5, atol=1e-5), (loss, ref)

    # --- 2) multi-tile accumulator path (grid > 1, zero row-padding exercised) ---
    b2 = 300
    c_pred2 = jax.random.normal(k[6], (b2, 8), dtype=jnp.float32)
    c_real2 = jax.random.normal(k[7], (b2, 12), dtype=jnp.float32)
    u_pred2 = jax.random.normal(k[8], (b2, 10), dtype=jnp.float32)
    u_real2 = jax.random.normal(k[9], (b2, 10), dtype=jnp.float32)
    loss2 = jax.block_until_ready(_parser_loss_jit(
        c_pred2, c_real2, u_pred2, u_real2,
        max_block_rows=8, force_parallel_partials=False))
    ref2 = _reference(c_pred2, c_real2, u_pred2, u_real2)
    assert jnp.allclose(loss2, ref2, rtol=1e-5, atol=1e-5), (loss2, ref2)

    # --- 3) multi-tile parallel-partials path (v7x megacore scheme) -------------
    loss3 = jax.block_until_ready(_parser_loss_jit(
        c_pred2, c_real2, u_pred2, u_real2,
        max_block_rows=8, force_parallel_partials=True))
    assert jnp.allclose(loss3, ref2, rtol=1e-5, atol=1e-5), (loss3, ref2)

    print("KERNEL_OK")
</pallas_src>

<mosaic_0001>
module attributes {stable_mosaic.version = 11 : i64} {
  func.func @kernel(%arg0: i32, %arg1: memref<8x128xf32, #tpu.memory_space<vmem>>, %arg2: memref<8x128xf32, #tpu.memory_space<vmem>>, %arg3: memref<8x128xf32, #tpu.memory_space<vmem>>, %arg4: memref<8x128xf32, #tpu.memory_space<vmem>>, %arg5: memref<8x128xf32, #tpu.memory_space<vmem>>) attributes {dimension_semantics = [#tpu.dimension_semantics<arbitrary>], iteration_bounds = array<i64: 1>, scalar_prefetch = 0 : i64, scratch_operands = 0 : i64, tpu.core_type = #tpu.core_type<tc>, window_params = [{transform_indices = @transform_0, window_bounds = array<i64: 8, 128>}, {transform_indices = @transform_1, window_bounds = array<i64: 8, 128>}, {transform_indices = @transform_2, window_bounds = array<i64: 8, 128>}, {transform_indices = @transform_3, window_bounds = array<i64: 8, 128>}, {pipeline_mode = #tpu.pipeline_mode<synchronous>, transform_indices = @transform_4, window_bounds = array<i64: 8, 128>}]} {
    %c0_i32 = arith.constant 0 : i32
    %0 = arith.cmpi eq, %arg0, %c0_i32 : i32
    %1 = arith.extui %0 : i1 to i32
    %c0_i32_0 = arith.constant 0 : i32
    %2 = arith.cmpi ne, %1, %c0_i32_0 : i32
    scf.if %2 {
      %cst_15 = arith.constant 0.000000e+00 : f32
      %23 = vector.broadcast %cst_15 : f32 to vector<8x128xf32>
      %c0_16 = arith.constant 0 : index
      %c0_17 = arith.constant 0 : index
      %24 = vector.load %arg5[%c0_16, %c0_17] : memref<8x128xf32, #tpu.memory_space<vmem>>, vector<8x128xf32>
      tpu.vector_store %arg5[%c0_16, %c0_17], %23 {strides = array<i32>} : memref<8x128xf32, #tpu.memory_space<vmem>>, vector<8x128xf32>,
    } else {
    }
    %c0 = arith.constant 0 : index
    %c0_1 = arith.constant 0 : index
    %3 = vector.load %arg5[%c0, %c0_1] : memref<8x128xf32, #tpu.memory_space<vmem>>, vector<8x128xf32>
    %c0_2 = arith.constant 0 : index
    %c0_3 = arith.constant 0 : index
    %4 = vector.load %arg1[%c0_2, %c0_3] : memref<8x128xf32, #tpu.memory_space<vmem>>, vector<8x128xf32>
    %c0_4 = arith.constant 0 : index
    %c0_5 = arith.constant 0 : index
    %5 = vector.load %arg2[%c0_4, %c0_5] : memref<8x128xf32, #tpu.memory_space<vmem>>, vector<8x128xf32>
    %6 = arith.subf %4, %5 : vector<8x128xf32>
    %7 = math.absf %6 : vector<8x128xf32>
    %8 = vector.shape_cast %7 : vector<8x128xf32> to vector<1x8x128xf32>
    %cst = arith.constant dense<0.000000e+00> : vector<8x128xf32>
    %9 = vector.multi_reduction <add>, %8, %cst [0] : vector<1x8x128xf32> to vector<8x128xf32>
    %cst_6 = arith.constant 0.0416666679 : f32
    %10 = vector.broadcast %cst_6 : f32 to vector<8x128xf32>
    %11 = arith.mulf %9, %10 : vector<8x128xf32>
    %c0_7 = arith.constant 0 : index
    %c0_8 = arith.constant 0 : index
    %12 = vector.load %arg3[%c0_7, %c0_8] : memref<8x128xf32, #tpu.memory_space<vmem>>, vector<8x128xf32>
    %c0_9 = arith.constant 0 : index
    %c0_10 = arith.constant 0 : index
    %13 = vector.load %arg4[%c0_9, %c0_10] : memref<8x128xf32, #tpu.memory_space<vmem>>, vector<8x128xf32>
    %14 = arith.subf %12, %13 : vector<8x128xf32>
    %15 = math.absf %14 : vector<8x128xf32>
    %16 = vector.shape_cast %15 : vector<8x128xf32> to vector<1x8x128xf32>
    %cst_11 = arith.constant dense<0.000000e+00> : vector<8x128xf32>
    %17 = vector.multi_reduction <add>, %16, %cst_11 [0] : vector<1x8x128xf32> to vector<8x128xf32>
    %cst_12 = arith.constant 5.000000e-02 : f32
    %18 = vector.broadcast %cst_12 : f32 to vector<8x128xf32>
    %19 = arith.mulf %17, %18 : vector<8x128xf32>
    %20 = arith.addf %11, %19 : vector<8x128xf32>
    %21 = arith.addf %3, %20 : vector<8x128xf32>
    %c0_13 = arith.constant 0 : index
    %c0_14 = arith.constant 0 : index
    %22 = vector.load %arg5[%c0_13, %c0_14] : memref<8x128xf32, #tpu.memory_space<vmem>>, vector<8x128xf32>
    tpu.vector_store %arg5[%c0_13, %c0_14], %21 {strides = array<i32>} : memref<8x128xf32, #tpu.memory_space<vmem>>, vector<8x128xf32>,
    return
  }
  func.func @transform_0(%arg0: i32) -> (i32, i32) {
    %c0_i32 = arith.constant 0 : i32
    %c0_i32_0 = arith.constant 0 : i32
    return %arg0, %c0_i32 : i32, i32
  }
  func.func @transform_1(%arg0: i32) -> (i32, i32) {
    %c0_i32 = arith.constant 0 : i32
    %c0_i32_0 = arith.constant 0 : i32
    return %arg0, %c0_i32 : i32, i32
  }
  func.func @transform_2(%arg0: i32) -> (i32, i32) {
    %c0_i32 = arith.constant 0 : i32
    %c0_i32_0 = arith.constant 0 : i32
    return %arg0, %c0_i32 : i32, i32
  }
  func.func @transform_3(%arg0: i32) -> (i32, i32) {
    %c0_i32 = arith.constant 0 : i32
    %c0_i32_0 = arith.constant 0 : i32
    return %arg0, %c0_i32 : i32, i32
  }
  func.func @transform_4(%arg0: i32) -> (i32, i32) {
    %c0_i32 = arith.constant 0 : i32
    %c0_i32_0 = arith.constant 0 : i32
    %c0_i32_1 = arith.constant 0 : i32
    return %c0_i32, %c0_i32_0 : i32, i32
  }
}

</mosaic_0001>

<bundles_post_ra>
// kernel: _parser_loss_jit.1
= control target key start
LH: loop header
LB: loop body
LE: loop exit
PB: predicated region body
PF: predicated region fallthrough
CT: control target
= control target key end

     0   :  { %s83_s0 = inlined_call_operand.vmem [shape: f32[8,128], index: 0, kind: input, shape index: {}]   ;;  %s84_s1 = inlined_call_operand.vmem [shape: f32[8,128], index: 1, kind: input, shape index: {}]   ;;  %s85_s2 = inlined_call_operand.vmem [shape: f32[8,128], index: 2, kind: input, shape index: {}]   ;;  %s86_s3 = inlined_call_operand.vmem [shape: f32[8,128], index: 3, kind: input, shape index: {}]   ;;  %s87_s4 = inlined_call_operand.vmem [shape: f32[8,128], index: 4, kind: output, shape index: {}]  }
   0x1   :  { %v23_v0 = vld [vmem:[%s83_s0] sm:$0xff] }
   0x2   :  { %v24_v1 = vld [vmem:[%s84_s1] sm:$0xff] }
   0x3   :  { %v29_v2 = vld [vmem:[%s85_s2] sm:$0xff]  ;;  %v25_v3 = vsub.f32 %v23_v0, %v24_v1 }
   0x4   :  { %v30_v4 = vld [vmem:[%s86_s3] sm:$0xff] }
   0x5   :  { %v31_v5 = vsub.f32 %v29_v2, %v30_v4  ;;  %v26_v6 = vand.u32 2147483647, %v25_v3 }
   0x7   :  { %v32_v7 = vand.u32 2147483647, %v31_v5  ;;  %v28_v8 = vmul.f32 0.041666668, %v26_v6 }
   0x9   :  { %v34_v9 = vmul.f32 0.05, %v32_v7 }
   0xb   :  { %v35_v10 = vadd.f32 %v34_v9, %v28_v8 }
   0xd   :  { %37 = vst [vmem:[%s87_s4] sm:$0xff] %v35_v10 }

</bundles_post_ra>
